<compile_context>
chip_gen: v5e
topology: v5e:2x2
jax: 0.10.0
libtpu: 0.0.40
codegen_flags: <defaults>
</compile_context>

<pallas_src>
import jax
import jax.numpy as jnp
from jax import lax
from jax.experimental import pallas as pl

# ----- model sizes (small, consistent with the module's __init__) -----
HIDDEN = 32          # hidden_size
EMB_DIM = 32         # embedding.shape[1]
VOCAB = 50           # embedding.shape[0]
MAX_LEN = 30         # max_length
NUM_LAYERS = 2       # num_layers
GATE_PAD = 128       # each GRU gate padded to one 128-lane tile in the fused weights
assert HIDDEN <= GATE_PAD


def _attn_decoder_kernel(
    # inputs (whole arrays, VMEM-resident for the entire call)
    h0_ref,         # (NL, 1, H)   initial hidden state
    enc_ref,        # (L, H)       encoder outputs
    emb_att_ref,    # (T, L)       token-only attn logits: emb @ W_attn[:E] + b_attn
    emb_comb_ref,   # (T, H)       token-only combine part: emb @ W_comb[:E] + b_comb
    attn_wh_ref,    # (H, L)       hidden-rows of attn weight (pre-transposed)
    comb_wa_ref,    # (H, H)       attn_applied-rows of attn_combine weight
    wi_ref,         # (NL, H, 3*G) fused input->gate weights, gates r|z|n at lanes 0/G/2G
    wh_ref,         # (NL, H, 3*G) fused hidden->gate weights
    bi_ref,         # (NL, 1, 3*G) biases: [b_ir+b_hr | b_iz+b_hz | b_in]
    bhn_ref,        # (NL, 1, H)   b_hn (kept separate; multiplied by r)
    out_w_ref,      # (H, V)
    out_b_ref,      # (1, V)
    # outputs
    logp_ref,       # (T, V)       per-step log-probs (resident, written row-wise)
    hnew_ref,       # (NL, 1, H)   final hidden (written once at the end)
    attnw_ref,      # (T, L)       per-step attention weights (resident)
):
    f32 = jnp.float32
    H, G = HIDDEN, GATE_PAD
    T = logp_ref.shape[0]

    # Hoisted loads - read once, reused by every decode step.
    enc = enc_ref[...]
    attn_wh = attn_wh_ref[...]
    comb_wa = comb_wa_ref[...]
    out_w = out_w_ref[...]
    out_b = out_b_ref[...]
    wi = [wi_ref[l] for l in range(NUM_LAYERS)]
    wh = [wh_ref[l] for l in range(NUM_LAYERS)]
    bi = [bi_ref[l] for l in range(NUM_LAYERS)]
    bhn = [bhn_ref[l] for l in range(NUM_LAYERS)]

    def step(t, h_layers):
        # ---- attention scores + softmax (token-only part precomputed) ----
        logits = emb_att_ref[pl.ds(t, 1), :] + jnp.dot(
            h_layers[0], attn_wh, preferred_element_type=f32)            # (1, L)
        m = jnp.max(logits, axis=-1, keepdims=True)
        exps = jnp.exp(logits - m)
        attn_w = exps / jnp.sum(exps, axis=-1, keepdims=True)            # exact softmax
        attnw_ref[pl.ds(t, 1), :] = attn_w

        # ---- apply attention: (1, L) @ (L, H) ----
        attn_applied = jnp.dot(attn_w, enc, preferred_element_type=f32)  # (1, H)

        # ---- attn_combine + relu (token-only part precomputed) ----
        comb = emb_comb_ref[pl.ds(t, 1), :] + jnp.dot(
            attn_applied, comb_wa, preferred_element_type=f32)
        x = jnp.maximum(comb, 0.0)                                       # (1, H)

        # ---- stacked GRU (seq_len = 1, batch = 1), gate-fused matmuls ----
        new_layers = []
        for layer in range(NUM_LAYERS):
            h_prev = h_layers[layer]                                     # (1, H)
            gi = jnp.dot(x, wi[layer], preferred_element_type=f32) + bi[layer]
            gh = jnp.dot(h_prev, wh[layer], preferred_element_type=f32)  # (1, 3G)
            # r and z share one fused sigmoid over two adjacent lane tiles
            rz = jax.nn.sigmoid(gi[:, 0:2 * G] + gh[:, 0:2 * G])
            r = rz[:, 0:H]
            z = rz[:, G:G + H]
            n = jnp.tanh(gi[:, 2 * G:2 * G + H]
                         + r * (gh[:, 2 * G:2 * G + H] + bhn[layer]))
            h_new = (1.0 - z) * n + z * h_prev
            new_layers.append(h_new)
            x = h_new                        # this layer's output feeds the next layer

        # ---- output projection + log_softmax (off the hidden-carry critical path) ----
        o = jnp.dot(x, out_w, preferred_element_type=f32) + out_b        # (1, V)
        mo = jnp.max(o, axis=-1, keepdims=True)
        lse = jnp.log(jnp.sum(jnp.exp(o - mo), axis=-1, keepdims=True)) + mo
        logp_ref[pl.ds(t, 1), :] = o - lse

        return tuple(new_layers)

    h0 = tuple(h0_ref[l] for l in range(NUM_LAYERS))
    h_final = lax.fori_loop(0, T, step, h0, unroll=True if T <= 8 else 2)
    for l in range(NUM_LAYERS):
        hnew_ref[l] = h_final[l]


def init_params(key):
    """Deterministic synthetic parameters, same shapes/layout as the PyTorch module."""
    ks = jax.random.split(key, 11)
    s = 0.1
    p = {}
    p["embedding"] = jax.random.normal(ks[0], (VOCAB, EMB_DIM), jnp.float32)
    # nn.Linear(emb_dim + hidden, max_length): weight (L, E+H), bias (L,)
    p["attn_w"] = s * jax.random.normal(ks[1], (MAX_LEN, EMB_DIM + HIDDEN), jnp.float32)
    p["attn_b"] = s * jax.random.normal(ks[2], (MAX_LEN,), jnp.float32)
    # nn.Linear(emb_dim + hidden, hidden)
    p["comb_w"] = s * jax.random.normal(ks[3], (HIDDEN, EMB_DIM + HIDDEN), jnp.float32)
    p["comb_b"] = s * jax.random.normal(ks[4], (HIDDEN,), jnp.float32)
    # GRU per layer: weight_ih (3H,H), weight_hh (3H,H), biases (3H,)  [gate order r,z,n]
    p["gru_w_ih"] = s * jax.random.normal(ks[5], (NUM_LAYERS, 3 * HIDDEN, HIDDEN), jnp.float32)
    p["gru_w_hh"] = s * jax.random.normal(ks[6], (NUM_LAYERS, 3 * HIDDEN, HIDDEN), jnp.float32)
    p["gru_b_ih"] = s * jax.random.normal(ks[7], (NUM_LAYERS, 3 * HIDDEN), jnp.float32)
    p["gru_b_hh"] = s * jax.random.normal(ks[8], (NUM_LAYERS, 3 * HIDDEN), jnp.float32)
    # nn.Linear(hidden, vocab)
    p["out_w"] = s * jax.random.normal(ks[9], (VOCAB, HIDDEN), jnp.float32)
    p["out_b"] = s * jax.random.normal(ks[10], (VOCAB,), jnp.float32)
    # learnable hidden0 (num_layers, 1, hidden)
    p["hidden0"] = jnp.zeros((NUM_LAYERS, 1, HIDDEN), jnp.float32)
    return p


def prepare_params(params):
    """One-time packing/transposition of module parameters into kernel layout.

    Called once per model - NOT per decode step."""
    H, E, G = HIDDEN, EMB_DIM, GATE_PAD
    pp = {}
    # embedding table stays 2-D (V, E); rows are gathered in the (jitted) wrapper.
    pp["emb_table"] = params["embedding"]

    # attn / attn_combine: pre-transposed and split into [emb rows | hidden/attn rows]
    attn_wt = params["attn_w"].T                              # (E+H, L)
    pp["attn_w_e"] = attn_wt[:E]                              # (E, L)  token-only part
    pp["attn_w_h"] = attn_wt[E:E + H]                         # (H, L)  in-kernel part
    pp["attn_b"] = params["attn_b"].reshape(1, MAX_LEN)
    comb_wt = params["comb_w"].T                               # (E+H, H)
    pp["comb_w_e"] = comb_wt[:E]                               # (E, H)  token-only part
    pp["comb_w_a"] = comb_wt[E:E + H]                          # (H, H)  in-kernel part
    pp["comb_b"] = params["comb_b"].reshape(1, H)

    # GRU: fuse the 3 gates (r,z,n) into single matmuls per side. Gate g lives at
    # lane offset g*GATE_PAD (padded to a full 128-lane tile; pad columns are zero).
    def pack_gate_weights(w):                                  # (NL, 3H, H) -> (NL, H, 3G)
        packed = jnp.zeros((NUM_LAYERS, H, 3 * G), jnp.float32)
        for g in range(3):
            w_g = jnp.transpose(w[:, g * H:(g + 1) * H, :], (0, 2, 1))   # (NL, H, H)
            packed = packed.at[:, :, g * G:g * G + H].set(w_g)
        return packed

    def pack_gate_bias(b):                                     # (NL, 3H) -> (NL, 1, 3G)
        packed = jnp.zeros((NUM_LAYERS, 1, 3 * G), jnp.float32)
        for g in range(3):
            packed = packed.at[:, 0, g * G:g * G + H].set(b[:, g * H:(g + 1) * H])
        return packed

    pp["gru_w_i"] = pack_gate_weights(params["gru_w_ih"])
    pp["gru_w_h"] = pack_gate_weights(params["gru_w_hh"])
    # r/z hidden-side biases pre-summed into the input-side slab; b_hn stays separate
    # because r multiplies (W_hn h + b_hn).
    b_hh_rz_only = params["gru_b_hh"].at[:, 2 * H:3 * H].set(0.0)
    pp["gru_b_i"] = pack_gate_bias(params["gru_b_ih"]) + pack_gate_bias(b_hh_rz_only)
    pp["gru_b_hn"] = params["gru_b_hh"][:, 2 * H:3 * H].reshape(NUM_LAYERS, 1, H)

    pp["out_w"] = params["out_w"].T                            # (H, V)
    pp["out_b"] = params["out_b"].reshape(1, VOCAB)
    pp["hidden0"] = params["hidden0"]
    return pp


@jax.jit
def attn_decoder_steps(token_ids, hidden, encoder_outputs, pp):
    """Run T sequential teacher-forced decode steps in ONE pallas_call (no grid).

    token_ids:       (T,)  int32
    hidden:          (NUM_LAYERS, 1, H) initial hidden state
    encoder_outputs: (MAX_LEN, H)
    pp:              dict from prepare_params()
    Returns: log_probs (T, V), final hidden (NUM_LAYERS, 1, H), attn_weights (T, L).
    """
    T = token_ids.shape[0]

    # Token-only precompute, hoisted out of the serial recurrence: one embedding gather
    # (jnp.take clamps out-of-range ids) and two M=T matmuls instead of 2T M=1 matmuls.
    emb_all = jnp.take(pp["emb_table"], token_ids, axis=0)            # (T, E)
    emb_att = emb_all @ pp["attn_w_e"] + pp["attn_b"]                 # (T, L)
    emb_comb = emb_all @ pp["comb_w_e"] + pp["comb_b"]                # (T, H)

    logp, hnew, attnw = pl.pallas_call(
        _attn_decoder_kernel,
        out_shape=(
            jax.ShapeDtypeStruct((T, VOCAB), jnp.float32),
            jax.ShapeDtypeStruct((NUM_LAYERS, 1, HIDDEN), jnp.float32),
            jax.ShapeDtypeStruct((T, MAX_LEN), jnp.float32),
        ),
    )(hidden, encoder_outputs, emb_att, emb_comb,
      pp["attn_w_h"], pp["comb_w_a"],
      pp["gru_w_i"], pp["gru_w_h"], pp["gru_b_i"], pp["gru_b_hn"],
      pp["out_w"], pp["out_b"])

    return logp, hnew, attnw


def attn_decoder_forward(token_id, hidden, encoder_outputs, pp):
    """Single decode step - exactly the PyTorch module's forward (eval mode)."""
    token_ids = jnp.asarray(token_id, jnp.int32).reshape(1)
    logp, hnew, attnw = attn_decoder_steps(token_ids, hidden, encoder_outputs, pp)
    return logp, hnew, attnw     # (1, V), (NL, 1, H), (1, L)


def reference_step(token_id, hidden, encoder_outputs, params):
    """Pure-JAX reference implementing the PyTorch forward verbatim (eval mode)."""
    H, E = HIDDEN, EMB_DIM
    emb = params["embedding"][token_id].reshape(1, E)
    cat = jnp.concatenate([emb, hidden[0]], axis=1)
    attn_w = jax.nn.softmax(cat @ params["attn_w"].T + params["attn_b"], axis=1)
    attn_applied = attn_w @ encoder_outputs
    comb = (jnp.concatenate([emb, attn_applied], axis=1) @ params["comb_w"].T
            + params["comb_b"])
    x = jax.nn.relu(comb)
    new_h = []
    for l in range(NUM_LAYERS):
        h_prev = hidden[l]
        gi = x @ params["gru_w_ih"][l].T + params["gru_b_ih"][l]
        gh = h_prev @ params["gru_w_hh"][l].T + params["gru_b_hh"][l]
        r = jax.nn.sigmoid(gi[:, 0:H] + gh[:, 0:H])
        z = jax.nn.sigmoid(gi[:, H:2 * H] + gh[:, H:2 * H])
        n = jnp.tanh(gi[:, 2 * H:] + r * gh[:, 2 * H:])
        h_new = (1.0 - z) * n + z * h_prev
        new_h.append(h_new)
        x = h_new
    logp = jax.nn.log_softmax(x @ params["out_w"].T + params["out_b"], axis=1)
    return logp, jnp.stack(new_h, axis=0), attn_w


if __name__ == "__main__":
    key = jax.random.PRNGKey(0)
    k_params, k_hid, k_enc = jax.random.split(key, 3)

    params = init_params(k_params)
    prepped = prepare_params(params)     # one-time parameter packing (not per step)

    hidden = 0.1 * jax.random.normal(k_hid, (NUM_LAYERS, 1, HIDDEN), jnp.float32)
    encoder_outputs = jax.random.normal(k_enc, (MAX_LEN, HIDDEN), jnp.float32)

    # ---------------- single decode step (the module's forward) ----------------
    token_id = jnp.array(7, dtype=jnp.int32)
    log_probs, new_hidden, attn_weights = attn_decoder_forward(
        token_id, hidden, encoder_outputs, prepped)
    jax.block_until_ready((log_probs, new_hidden, attn_weights))

    ref_logp, ref_hidden, ref_attnw = reference_step(
        token_id, hidden, encoder_outputs, params)

    assert log_probs.shape == (1, VOCAB)
    assert new_hidden.shape == (NUM_LAYERS, 1, HIDDEN)
    assert attn_weights.shape == (1, MAX_LEN)
    assert bool(jnp.all(jnp.isfinite(log_probs)))
    assert bool(jnp.allclose(jnp.sum(jnp.exp(log_probs)), 1.0, atol=1e-3))
    assert bool(jnp.allclose(jnp.sum(attn_weights), 1.0, atol=1e-3))
    assert bool(jnp.allclose(log_probs, ref_logp, atol=1e-2, rtol=0.0))
    assert bool(jnp.allclose(new_hidden, ref_hidden, atol=1e-2, rtol=0.0))
    assert bool(jnp.allclose(attn_weights, ref_attnw, atol=1e-2, rtol=0.0))

    # ------- amortized multi-step path: whole T-step recurrence in one kernel -------
    T = 6
    token_seq = (jnp.arange(T, dtype=jnp.int32) * 5 + 3) % VOCAB
    logp_seq, hid_T, attnw_seq = attn_decoder_steps(
        token_seq, hidden, encoder_outputs, prepped)
    jax.block_until_ready((logp_seq, hid_T, attnw_seq))

    # sequential pure-JAX reference over the same teacher-forced tokens
    h_ref = hidden
    ref_lps = []
    for t in range(T):
        lp_t, h_ref, _ = reference_step(token_seq[t], h_ref, encoder_outputs, params)
        ref_lps.append(lp_t)
    ref_lps = jnp.concatenate(ref_lps, axis=0)

    assert logp_seq.shape == (T, VOCAB)
    assert attnw_seq.shape == (T, MAX_LEN)
    assert bool(jnp.allclose(logp_seq, ref_lps, atol=1e-2, rtol=0.0))
    assert bool(jnp.allclose(hid_T, h_ref, atol=1e-2, rtol=0.0))

    print("KERNEL_OK")
</pallas_src>

<mosaic_0001>
module attributes {stable_mosaic.version = 11 : i64} {
  func.func @_attn_decoder_kernel(%arg0: memref<2x1x32xf32, #tpu.memory_space<vmem>>, %arg1: memref<30x32xf32, #tpu.memory_space<vmem>>, %arg2: memref<1x30xf32, #tpu.memory_space<vmem>>, %arg3: memref<1x32xf32, #tpu.memory_space<vmem>>, %arg4: memref<32x30xf32, #tpu.memory_space<vmem>>, %arg5: memref<32x32xf32, #tpu.memory_space<vmem>>, %arg6: memref<2x32x384xf32, #tpu.memory_space<vmem>>, %arg7: memref<2x32x384xf32, #tpu.memory_space<vmem>>, %arg8: memref<2x1x384xf32, #tpu.memory_space<vmem>>, %arg9: memref<2x1x32xf32, #tpu.memory_space<vmem>>, %arg10: memref<32x50xf32, #tpu.memory_space<vmem>>, %arg11: memref<1x50xf32, #tpu.memory_space<vmem>>, %arg12: memref<1x50xf32, #tpu.memory_space<vmem>>, %arg13: memref<2x1x32xf32, #tpu.memory_space<vmem>>, %arg14: memref<1x30xf32, #tpu.memory_space<vmem>>) attributes {dimension_semantics = [], scalar_prefetch = 0 : i64, scratch_operands = 0 : i64, tpu.core_type = #tpu.core_type<tc>} {
    %c0 = arith.constant 0 : index
    %c0_0 = arith.constant 0 : index
    %0 = vector.load %arg1[%c0, %c0_0] : memref<30x32xf32, #tpu.memory_space<vmem>>, vector<30x32xf32>
    %c0_1 = arith.constant 0 : index
    %c0_2 = arith.constant 0 : index
    %1 = vector.load %arg4[%c0_1, %c0_2] : memref<32x30xf32, #tpu.memory_space<vmem>>, vector<32x30xf32>
    %c0_3 = arith.constant 0 : index
    %c0_4 = arith.constant 0 : index
    %2 = vector.load %arg5[%c0_3, %c0_4] : memref<32x32xf32, #tpu.memory_space<vmem>>, vector<32x32xf32>
    %c0_5 = arith.constant 0 : index
    %c0_6 = arith.constant 0 : index
    %3 = vector.load %arg10[%c0_5, %c0_6] : memref<32x50xf32, #tpu.memory_space<vmem>>, vector<32x50xf32>
    %c0_7 = arith.constant 0 : index
    %c0_8 = arith.constant 0 : index
    %4 = vector.load %arg11[%c0_7, %c0_8] : memref<1x50xf32, #tpu.memory_space<vmem>>, vector<1x50xf32>
    %c0_9 = arith.constant 0 : index
    %c0_10 = arith.constant 0 : index
    %c0_11 = arith.constant 0 : index
    %5 = vector.load %arg6[%c0_9, %c0_10, %c0_11] : memref<2x32x384xf32, #tpu.memory_space<vmem>>, vector<1x32x384xf32>
    %6 = vector.shape_cast %5 : vector<1x32x384xf32> to vector<32x384xf32>
    %c1 = arith.constant 1 : index
    %c0_12 = arith.constant 0 : index
    %c0_13 = arith.constant 0 : index
    %7 = vector.load %arg6[%c1, %c0_12, %c0_13] : memref<2x32x384xf32, #tpu.memory_space<vmem>>, vector<1x32x384xf32>
    %8 = vector.shape_cast %7 : vector<1x32x384xf32> to vector<32x384xf32>
    %c0_14 = arith.constant 0 : index
    %c0_15 = arith.constant 0 : index
    %c0_16 = arith.constant 0 : index
    %9 = vector.load %arg7[%c0_14, %c0_15, %c0_16] : memref<2x32x384xf32, #tpu.memory_space<vmem>>, vector<1x32x384xf32>
    %10 = vector.shape_cast %9 : vector<1x32x384xf32> to vector<32x384xf32>
    %c1_17 = arith.constant 1 : index
    %c0_18 = arith.constant 0 : index
    %c0_19 = arith.constant 0 : index
    %11 = vector.load %arg7[%c1_17, %c0_18, %c0_19] : memref<2x32x384xf32, #tpu.memory_space<vmem>>, vector<1x32x384xf32>
    %12 = vector.shape_cast %11 : vector<1x32x384xf32> to vector<32x384xf32>
    %c0_20 = arith.constant 0 : index
    %c0_21 = arith.constant 0 : index
    %c0_22 = arith.constant 0 : index
    %13 = vector.load %arg8[%c0_20, %c0_21, %c0_22] : memref<2x1x384xf32, #tpu.memory_space<vmem>>, vector<1x1x384xf32>
    %14 = vector.shape_cast %13 : vector<1x1x384xf32> to vector<1x384xf32>
    %c1_23 = arith.constant 1 : index
    %c0_24 = arith.constant 0 : index
    %c0_25 = arith.constant 0 : index
    %15 = vector.load %arg8[%c1_23, %c0_24, %c0_25] : memref<2x1x384xf32, #tpu.memory_space<vmem>>, vector<1x1x384xf32>
    %16 = vector.shape_cast %15 : vector<1x1x384xf32> to vector<1x384xf32>
    %c0_26 = arith.constant 0 : index
    %c0_27 = arith.constant 0 : index
    %c0_28 = arith.constant 0 : index
    %17 = vector.load %arg9[%c0_26, %c0_27, %c0_28] : memref<2x1x32xf32, #tpu.memory_space<vmem>>, vector<1x1x32xf32>
    %18 = vector.shape_cast %17 : vector<1x1x32xf32> to vector<1x32xf32>
    %c1_29 = arith.constant 1 : index
    %c0_30 = arith.constant 0 : index
    %c0_31 = arith.constant 0 : index
    %19 = vector.load %arg9[%c1_29, %c0_30, %c0_31] : memref<2x1x32xf32, #tpu.memory_space<vmem>>, vector<1x1x32xf32>
    %20 = vector.shape_cast %19 : vector<1x1x32xf32> to vector<1x32xf32>
    %c0_32 = arith.constant 0 : index
    %c0_33 = arith.constant 0 : index
    %c0_34 = arith.constant 0 : index
    %21 = vector.load %arg0[%c0_32, %c0_33, %c0_34] : memref<2x1x32xf32, #tpu.memory_space<vmem>>, vector<1x1x32xf32>
    %22 = vector.shape_cast %21 : vector<1x1x32xf32> to vector<1x32xf32>
    %c1_35 = arith.constant 1 : index
    %c0_36 = arith.constant 0 : index
    %c0_37 = arith.constant 0 : index
    %23 = vector.load %arg0[%c1_35, %c0_36, %c0_37] : memref<2x1x32xf32, #tpu.memory_space<vmem>>, vector<1x1x32xf32>
    %24 = vector.shape_cast %23 : vector<1x1x32xf32> to vector<1x32xf32>
    %c0_i32 = arith.constant 0 : i32
    %25 = arith.index_cast %c0_i32 : i32 to index
    %c0_38 = arith.constant 0 : index
    %26 = vector.load %arg2[%25, %c0_38] : memref<1x30xf32, #tpu.memory_space<vmem>>, vector<1x30xf32>
    %cst = arith.constant dense<0.000000e+00> : vector<1x30xf32>
    %27 = tpu.matmul %22, %1, %cst {dimension_numbers = #tpu.dot_dimension_numbers<[1], [0], [0], [1], [0, 0, 1, 1], [], []>} : vector<1x32xf32>, vector<32x30xf32>, vector<1x30xf32> -> vector<1x30xf32>
    %28 = arith.addf %26, %27 : vector<1x30xf32>
    %cst_39 = arith.constant dense<0xFF800000> : vector<1xf32>
    %29 = vector.multi_reduction <maximumf>, %28, %cst_39 [1] : vector<1x30xf32> to vector<1xf32>
    %30 = vector.shape_cast %29 : vector<1xf32> to vector<1x1xf32>
    %31 = vector.broadcast %30 : vector<1x1xf32> to vector<1x30xf32>
    %32 = arith.subf %28, %31 : vector<1x30xf32>
    %33 = math.exp %32 : vector<1x30xf32>
    %cst_40 = arith.constant dense<0.000000e+00> : vector<1xf32>
    %34 = vector.multi_reduction <add>, %33, %cst_40 [1] : vector<1x30xf32> to vector<1xf32>
    %35 = vector.shape_cast %34 : vector<1xf32> to vector<1x1xf32>
    %36 = vector.broadcast %35 : vector<1x1xf32> to vector<1x30xf32>
    %37 = arith.divf %33, %36 : vector<1x30xf32>
    %38 = arith.index_cast %c0_i32 : i32 to index
    %c0_41 = arith.constant 0 : index
    %39 = vector.load %arg14[%38, %c0_41] : memref<1x30xf32, #tpu.memory_space<vmem>>, vector<1x30xf32>
    tpu.vector_store %arg14[%38, %c0_41], %37 {strides = array<i32>} : memref<1x30xf32, #tpu.memory_space<vmem>>, vector<1x30xf32>,
    %cst_42 = arith.constant dense<0.000000e+00> : vector<1x32xf32>
    %40 = tpu.matmul %37, %0, %cst_42 {dimension_numbers = #tpu.dot_dimension_numbers<[1], [0], [0], [1], [0, 0, 1, 1], [], []>} : vector<1x30xf32>, vector<30x32xf32>, vector<1x32xf32> -> vector<1x32xf32>
    %41 = arith.index_cast %c0_i32 : i32 to index
    %c0_43 = arith.constant 0 : index
    %42 = vector.load %arg3[%41, %c0_43] : memref<1x32xf32, #tpu.memory_space<vmem>>, vector<1x32xf32>
    %cst_44 = arith.constant dense<0.000000e+00> : vector<1x32xf32>
    %43 = tpu.matmul %40, %2, %cst_44 {dimension_numbers = #tpu.dot_dimension_numbers<[1], [0], [0], [1], [0, 0, 1, 1], [], []>} : vector<1x32xf32>, vector<32x32xf32>, vector<1x32xf32> -> vector<1x32xf32>
    %44 = arith.addf %42, %43 : vector<1x32xf32>
    %cst_45 = arith.constant 0.000000e+00 : f32
    %45 = vector.broadcast %cst_45 : f32 to vector<1x32xf32>
    %46 = arith.maximumf %44, %45 : vector<1x32xf32>
    %cst_46 = arith.constant dense<0.000000e+00> : vector<1x384xf32>
    %47 = tpu.matmul %46, %6, %cst_46 {dimension_numbers = #tpu.dot_dimension_numbers<[1], [0], [0], [1], [0, 0, 1, 1], [], []>} : vector<1x32xf32>, vector<32x384xf32>, vector<1x384xf32> -> vector<1x384xf32>
    %48 = arith.addf %47, %14 : vector<1x384xf32>
    %cst_47 = arith.constant dense<0.000000e+00> : vector<1x384xf32>
    %49 = tpu.matmul %22, %10, %cst_47 {dimension_numbers = #tpu.dot_dimension_numbers<[1], [0], [0], [1], [0, 0, 1, 1], [], []>} : vector<1x32xf32>, vector<32x384xf32>, vector<1x384xf32> -> vector<1x384xf32>
    %50 = vector.extract_strided_slice %48 {offsets = [0, 0], sizes = [1, 256], strides = [1, 1]} : vector<1x384xf32> to vector<1x256xf32>
    %51 = vector.extract_strided_slice %49 {offsets = [0, 0], sizes = [1, 256], strides = [1, 1]} : vector<1x384xf32> to vector<1x256xf32>
    %52 = arith.addf %50, %51 : vector<1x256xf32>
    %53 = arith.negf %52 : vector<1x256xf32>
    %54 = math.exp %53 : vector<1x256xf32>
    %cst_48 = arith.constant 1.000000e+00 : f32
    %55 = vector.broadcast %cst_48 : f32 to vector<1x256xf32>
    %56 = arith.addf %55, %54 : vector<1x256xf32>
    %57 = arith.divf %55, %56 : vector<1x256xf32>
    %58 = vector.extract_strided_slice %57 {offsets = [0, 0], sizes = [1, 32], strides = [1, 1]} : vector<1x256xf32> to vector<1x32xf32>
    %59 = vector.extract_strided_slice %57 {offsets = [0, 128], sizes = [1, 32], strides = [1, 1]} : vector<1x256xf32> to vector<1x32xf32>
    %60 = vector.extract_strided_slice %48 {offsets = [0, 256], sizes = [1, 32], strides = [1, 1]} : vector<1x384xf32> to vector<1x32xf32>
    %61 = vector.extract_strided_slice %49 {offsets = [0, 256], sizes = [1, 32], strides = [1, 1]} : vector<1x384xf32> to vector<1x32xf32>
    %62 = arith.addf %61, %18 : vector<1x32xf32>
    %63 = arith.mulf %58, %62 : vector<1x32xf32>
    %64 = arith.addf %60, %63 : vector<1x32xf32>
    %65 = math.tanh %64 : vector<1x32xf32>
    %cst_49 = arith.constant 1.000000e+00 : f32
    %66 = vector.broadcast %cst_49 : f32 to vector<1x32xf32>
    %67 = arith.subf %66, %59 : vector<1x32xf32>
    %68 = arith.mulf %67, %65 : vector<1x32xf32>
    %69 = arith.mulf %59, %22 : vector<1x32xf32>
    %70 = arith.addf %68, %69 : vector<1x32xf32>
    %cst_50 = arith.constant dense<0.000000e+00> : vector<1x384xf32>
    %71 = tpu.matmul %70, %8, %cst_50 {dimension_numbers = #tpu.dot_dimension_numbers<[1], [0], [0], [1], [0, 0, 1, 1], [], []>} : vector<1x32xf32>, vector<32x384xf32>, vector<1x384xf32> -> vector<1x384xf32>
    %72 = arith.addf %71, %16 : vector<1x384xf32>
    %cst_51 = arith.constant dense<0.000000e+00> : vector<1x384xf32>
    %73 = tpu.matmul %24, %12, %cst_51 {dimension_numbers = #tpu.dot_dimension_numbers<[1], [0], [0], [1], [0, 0, 1, 1], [], []>} : vector<1x32xf32>, vector<32x384xf32>, vector<1x384xf32> -> vector<1x384xf32>
    %74 = vector.extract_strided_slice %72 {offsets = [0, 0], sizes = [1, 256], strides = [1, 1]} : vector<1x384xf32> to vector<1x256xf32>
    %75 = vector.extract_strided_slice %73 {offsets = [0, 0], sizes = [1, 256], strides = [1, 1]} : vector<1x384xf32> to vector<1x256xf32>
    %76 = arith.addf %74, %75 : vector<1x256xf32>
    %77 = arith.negf %76 : vector<1x256xf32>
    %78 = math.exp %77 : vector<1x256xf32>
    %cst_52 = arith.constant 1.000000e+00 : f32
    %79 = vector.broadcast %cst_52 : f32 to vector<1x256xf32>
    %80 = arith.addf %79, %78 : vector<1x256xf32>
    %81 = arith.divf %79, %80 : vector<1x256xf32>
    %82 = vector.extract_strided_slice %81 {offsets = [0, 0], sizes = [1, 32], strides = [1, 1]} : vector<1x256xf32> to vector<1x32xf32>
    %83 = vector.extract_strided_slice %81 {offsets = [0, 128], sizes = [1, 32], strides = [1, 1]} : vector<1x256xf32> to vector<1x32xf32>
    %84 = vector.extract_strided_slice %72 {offsets = [0, 256], sizes = [1, 32], strides = [1, 1]} : vector<1x384xf32> to vector<1x32xf32>
    %85 = vector.extract_strided_slice %73 {offsets = [0, 256], sizes = [1, 32], strides = [1, 1]} : vector<1x384xf32> to vector<1x32xf32>
    %86 = arith.addf %85, %20 : vector<1x32xf32>
    %87 = arith.mulf %82, %86 : vector<1x32xf32>
    %88 = arith.addf %84, %87 : vector<1x32xf32>
    %89 = math.tanh %88 : vector<1x32xf32>
    %cst_53 = arith.constant 1.000000e+00 : f32
    %90 = vector.broadcast %cst_53 : f32 to vector<1x32xf32>
    %91 = arith.subf %90, %83 : vector<1x32xf32>
    %92 = arith.mulf %91, %89 : vector<1x32xf32>
    %93 = arith.mulf %83, %24 : vector<1x32xf32>
    %94 = arith.addf %92, %93 : vector<1x32xf32>
    %cst_54 = arith.constant dense<0.000000e+00> : vector<1x50xf32>
    %95 = tpu.matmul %94, %3, %cst_54 {dimension_numbers = #tpu.dot_dimension_numbers<[1], [0], [0], [1], [0, 0, 1, 1], [], []>} : vector<1x32xf32>, vector<32x50xf32>, vector<1x50xf32> -> vector<1x50xf32>
    %96 = arith.addf %95, %4 : vector<1x50xf32>
    %cst_55 = arith.constant dense<0xFF800000> : vector<1xf32>
    %97 = vector.multi_reduction <maximumf>, %96, %cst_55 [1] : vector<1x50xf32> to vector<1xf32>
    %98 = vector.shape_cast %97 : vector<1xf32> to vector<1x1xf32>
    %99 = vector.broadcast %98 : vector<1x1xf32> to vector<1x50xf32>
    %100 = arith.subf %96, %99 : vector<1x50xf32>
    %101 = math.exp %100 : vector<1x50xf32>
    %cst_56 = arith.constant dense<0.000000e+00> : vector<1xf32>
    %102 = vector.multi_reduction <add>, %101, %cst_56 [1] : vector<1x50xf32> to vector<1xf32>
    %103 = vector.shape_cast %102 : vector<1xf32> to vector<1x1xf32>
    %104 = math.log %103 : vector<1x1xf32>
    %105 = arith.addf %104, %98 : vector<1x1xf32>
    %106 = vector.broadcast %105 : vector<1x1xf32> to vector<1x50xf32>
    %107 = arith.subf %96, %106 : vector<1x50xf32>
    %108 = arith.index_cast %c0_i32 : i32 to index
    %c0_57 = arith.constant 0 : index
    %109 = vector.load %arg12[%108, %c0_57] : memref<1x50xf32, #tpu.memory_space<vmem>>, vector<1x50xf32>
    tpu.vector_store %arg12[%108, %c0_57], %107 {strides = array<i32>} : memref<1x50xf32, #tpu.memory_space<vmem>>, vector<1x50xf32>,
    %c1_i32 = arith.constant 1 : i32
    %c0_58 = arith.constant 0 : index
    %c0_59 = arith.constant 0 : index
    %c0_60 = arith.constant 0 : index
    %110 = vector.load %arg13[%c0_58, %c0_59, %c0_60] : memref<2x1x32xf32, #tpu.memory_space<vmem>>, vector<1x1x32xf32>
    %111 = vector.shape_cast %110 : vector<1x1x32xf32> to vector<1x32xf32>
    %112 = vector.shape_cast %70 : vector<1x32xf32> to vector<1x1x32xf32>
    tpu.vector_store %arg13[%c0_58, %c0_59, %c0_60], %112 {strides = array<i32>} : memref<2x1x32xf32, #tpu.memory_space<vmem>>, vector<1x1x32xf32>,
    %c1_61 = arith.constant 1 : index
    %c0_62 = arith.constant 0 : index
    %c0_63 = arith.constant 0 : index
    %113 = vector.load %arg13[%c1_61, %c0_62, %c0_63] : memref<2x1x32xf32, #tpu.memory_space<vmem>>, vector<1x1x32xf32>
    %114 = vector.shape_cast %113 : vector<1x1x32xf32> to vector<1x32xf32>
    %115 = vector.shape_cast %94 : vector<1x32xf32> to vector<1x1x32xf32>
    tpu.vector_store %arg13[%c1_61, %c0_62, %c0_63], %115 {strides = array<i32>} : memref<2x1x32xf32, #tpu.memory_space<vmem>>, vector<1x1x32xf32>,
    return
  }
}

</mosaic_0001>

<bundles_post_ra>
// kernel: attn_decoder_steps.1
= control target key start
LH: loop header
LB: loop body
LE: loop exit
PB: predicated region body
PF: predicated region fallthrough
CT: control target
= control target key end

     0   :  { %s1231_s0 = inlined_call_operand.vmem [shape: f32[2,1,32], index: 0, kind: input, shape index: {}]   ;;  %s1232_s1 = inlined_call_operand.vmem [shape: f32[30,32], index: 1, kind: input, shape index: {}]   ;;  %s1233_s2 = inlined_call_operand.vmem [shape: f32[1,30], index: 2, kind: input, shape index: {}]   ;;  %s1234_s3 = inlined_call_operand.vmem [shape: f32[1,32], index: 3, kind: input, shape index: {}]   ;;  %s1235_s4 = inlined_call_operand.vmem [shape: f32[32,30], index: 4, kind: input, shape index: {}]   ;;  %s1236_s5 = inlined_call_operand.hbm [shape: f32[32,32], index: 5, kind: input, shape index: {}]   ;;  %s1237_s6 = inlined_call_operand.hbm [shape: f32[2,32,384], index: 6, kind: input, shape index: {}]   ;;  %s1238_s7 = inlined_call_operand.hbm [shape: f32[2,32,384], index: 7, kind: input, shape index: {}]   ;;  %s1239_s8 = inlined_call_operand.vmem [shape: f32[2,1,384], index: 8, kind: input, shape index: {}]   ;;  %s1240_s9 = inlined_call_operand.hbm [shape: f32[2,1,32], index: 9, kind: input, shape index: {}]   ;;  %s1241_s10 = inlined_call_operand.hbm [shape: f32[32,50], index: 10, kind: input, shape index: {}]   ;;  %s1242_s11 = inlined_call_operand.vmem [shape: f32[1,50], index: 11, kind: input, shape index: {}]   ;;  %s1243_s12 = inlined_call_operand.hbm [shape: f32[1,50], index: 12, kind: output, shape index: {0}]   ;;  %s1244_s13 = inlined_call_operand.hbm [shape: f32[2,1,32], index: 13, kind: output, shape index: {1}]   ;;  %s1245_s14 = inlined_call_operand.hbm [shape: f32[1,30], index: 14, kind: output, shape index: {2}]  }
   0x1   :  { %1246 = sst [smem:[#allocation20_spill]] %s1243_s12 }
   0x2   :  { %20 = vsyncpa [#allocation3], 0 }
   0x3   :  { %21 = vsyncpa [#allocation6], 0 }
   0x4   :  { %22 = vsyncpa [#allocation9], 0 }
   0x5   :  { %23 = vsyncpa [#allocation4], 0  ;;  %s52_s15 = sshll.u32 %s1237_s6, 4  ;;  %s53_s15 = int_to_ptr.hbm [resolvable:$true] %s52_s15 }
   0x6   :  { %24 = vsyncpa [#allocation13], 0  ;;  %s1026_s16 = smov [#allocation5]   ;;  %s80_s20 = sshll.u32 %s1240_s9, 4  ;;  %s81_s20 = int_to_ptr.hbm [resolvable:$true] %s80_s20 }
   0x7   :  { %s54_s17 = sshll.u32 %s1026_s16, 4  ;;  %s1027_s21 = smov 384   ;;  %s55_s17 = int_to_ptr.vmem [resolvable:$true] %s54_s17 }
   0x8   :  { %s1028_s22 = smov 24   ;;  %s1029_s23 = smov [#allocation8]  }
   0x9   :  { %60 = dma.hbm_to_vmem [thread:$0]  %s53_s15, 3072, %s55_s17, [#allocation6], %s1027_s21, %s1027_s21, %s1028_s22  }
   0xa   :  { %s82_s24 = sshll.u32 %s1029_s23, 4  ;;  %s1030_s25 = smov 16   ;;  %s83_s24 = int_to_ptr.vmem [resolvable:$true] %s82_s24 }
   0xb   :  { %s1031_s26 = smov 1   ;;  %s39_s28 = sshll.u32 %s1236_s5, 4  ;;  %s40_s28 = int_to_ptr.hbm [resolvable:$true] %s39_s28 }
   0xc   :  { %88 = dma.hbm_to_vmem [thread:$0]  %s81_s20, 32, %s83_s24, [#allocation9], %s1030_s25, %s1030_s25, %s1031_s26  }
   0xd   :  { %s1032_s29 = smov [#allocation2]   ;;  %s65_s16 = sshll.u32 %s1238_s7, 4  ;;  %s66_s16 = int_to_ptr.hbm [resolvable:$true] %s65_s16 }
   0xe   :  { %s41_s9 = sshll.u32 %s1032_s29, 4  ;;  %s1033_s17 = smov 128   ;;  %s42_s9 = int_to_ptr.vmem [resolvable:$true] %s41_s9 }
   0xf   :  { %s1034_s18 = smov 8   ;;  %s1035_s19 = smov [#allocation7]  }
  0x10   :  { %47 = dma.hbm_to_vmem [thread:$0]  %s40_s28, 512, %s42_s9, [#allocation3], %s1033_s17, %s1033_s17, %s1034_s18  }
  0x11   :  { %s67_s23 = sshll.u32 %s1035_s19, 4  ;;  %s93_s24 = sshll.u32 %s1241_s10, 4  ;;  %s68_s23 = int_to_ptr.vmem [resolvable:$true] %s67_s23  ;;  %s94_s24 = int_to_ptr.hbm [resolvable:$true] %s93_s24 }
  0x12   :  { %73 = dma.hbm_to_vmem [thread:$0]  %s66_s16, 3072, %s68_s23, [#allocation6], %s1027_s21, %s1027_s21, %s1028_s22  }
  0x13   :  { %s1036_s5 = smov [#allocation10]  }
  0x14   :  { %s95_s6 = sshll.u32 %s1036_s5, 4  ;;  %s96_s6 = int_to_ptr.vmem [resolvable:$true] %s95_s6 }
  0x15   :  { %101 = dma.hbm_to_vmem [thread:$0]  %s94_s24, 512, %s96_s6, [#allocation9], %s1033_s17, %s1033_s17, %s1034_s18  }
  0x16   :  { %1016 = dma.done.wait [#allocation3], 512  }
  0x17   :  { %1017 = vsyncadd [#allocation3], 4294966784 }
  0x18   :  { %1018 = dma.done.wait [#allocation6], 6144  }
  0x19   :  { %1019 = vsyncadd [#allocation6], 4294961152 }
  0x1a   :  { %1020 = dma.done.wait [#allocation9], 544  }
  0x1b   :  { %1021 = vsyncadd [#allocation9], 4294966752  ;;  %v131_v0 = vld [vmem:[%s1235_s4 + $0x18] sm:$0xff]  ;;  %v130_v1 = vld [vmem:[%s1235_s4 + $0x10] sm:$0xff]  ;;  %vm201_vm0 = vcmask 261120   ;;  %vm226_vm1 = vcmask 237568  }
  0x1c   :  { %217 = vmatpush.msra.mxu0 %v131_v0  ;;  %v129_v2 = vld [vmem:[%s1235_s4 + $0x8] sm:$0xff]  ;;  %v128_v3 = vld [vmem:[%s1235_s4] sm:$0xff]  ;;  %v127_v14 = vld [vmem:[%s1232_s1 + $0x18] sm:$0x3f]  ;;  %vm256_vm2 = vcmask 1045504   ;;  %vm252_vm7 = vcmask 244736  }
  0x1d   :  { %v1148_v4 = vld [vmem:[%s1231_s0] sm:$0x1]  ;;  %762 = vmatpush.msk.msra.mxu1 %vm256_vm2, %v127_v14  ;;  %v126_v15 = vld [vmem:[%s1232_s1 + $0x10] sm:$0xff]  ;;  %v125_v16 = vld [vmem:[%s1232_s1 + $0x8] sm:$0xff]  ;;  %s1037_s10 = smov [#allocation12]   ;;  %s1038_s9 = smov [#allocation14]  }
  0x1e   :  { %218 = vmatpush.msra.mxu0 %v130_v1  ;;  %v200_v5 = vld [vmem:[%s1233_s2] sm:$0x1]  ;;  %v135_v18 = vld [vmem:[#allocation2 + $0x18] sm:$0xff]  ;;  %v134_v19 = vld [vmem:[#allocation2 + $0x10] sm:$0xff]  ;;  %s722_s21 = sshll.u32 %s1037_s10, 4  ;;  %s736_s30 = sshll.u32 %s1038_s9, 4  ;;  %s723_s21 = int_to_ptr.vmem [resolvable:$true] %s722_s21  ;;  %s737_s30 = int_to_ptr.vmem [resolvable:$true] %s736_s30 }
  0x1f   :  { %273 = vmatpush.msra.mxu1 %v126_v15  ;;  %v124_v17 = vld [vmem:[%s1232_s1] sm:$0xff]  ;;  %296 = vmatpush.msra.mxu2 %v135_v18  ;;  %v133_v20 = vld [vmem:[#allocation2 + $0x8] sm:$0xff]  ;;  %v151_v35 = vld [vmem:[#allocation5 + $0x50] sm:$0xff]  ;;  %s738_s4 = sshll.u32 %s1245_s14, 4  ;;  %s1247_s19 = sld [smem:[#allocation20_spill]]  ;;  %s739_s4 = int_to_ptr.hbm [resolvable:$true] %s738_s4 }
  0x20   :  { %219 = vmatpush.msra.mxu0 %v129_v2  ;;  %v132_v33 = vld [vmem:[#allocation2] sm:$0xff]  ;;  %v150_v34 = vld [vmem:[#allocation5 + $0x48] sm:$0xff]  ;;  %v152_v36 = vld [vmem:[#allocation5 + $0x58] sm:$0xff] }
  0x21   :  { %274 = vmatpush.msra.mxu1 %v125_v16  ;;  %297 = vmatpush.msra.mxu2 %v134_v19  ;;  %v175_v37 = vld [vmem:[#allocation7 + $0x48] sm:$0xff]  ;;  %v147_v39 = vld [vmem:[#allocation5 + $0x30] sm:$0xff]  ;;  %v148_v40 = vld [vmem:[#allocation5 + $0x38] sm:$0xff] }
  0x22   :  { %220 = vmatpush.msra.mxu0 %v128_v3  ;;  %328 = vmatpush.msra.mxu3 %v150_v34  ;;  %v149_v41 = vld [vmem:[#allocation5 + $0x40] sm:$0xff]  ;;  %v172_v42 = vld [vmem:[#allocation7 + $0x30] sm:$0xff]  ;;  %v144_v43 = vld [vmem:[#allocation5 + $0x18] sm:$0xff] }
  0x23   :  { %761 = vmatmul.msk.f32.vlgmr.msra.gmra.mxu0 %vm201_vm0, %v1148_v4  ;;  %275 = vmatpush.msra.mxu1 %v124_v17  ;;  %v145_v44 = vld [vmem:[#allocation5 + $0x20] sm:$0xff]  ;;  %v146_v45 = vld [vmem:[#allocation5 + $0x28] sm:$0xff]  ;;  %v169_v46 = vld [vmem:[#allocation7 + $0x18] sm:$0xff] }
  0x24   :  { %298 = vmatpush.msra.mxu2 %v133_v20  ;;  %348 = vmatpush.msrb.mxu0 %v151_v35  ;;  %v141_v47 = vld [vmem:[#allocation5] sm:$0xff]  ;;  %v142_v48 = vld [vmem:[#allocation5 + $0x8] sm:$0xff]  ;;  %v143_v49 = vld [vmem:[#allocation5 + $0x10] sm:$0xff] }
  0x25   :  { %368 = vmatpush.msrb.mxu1 %v152_v36  ;;  %329 = vmatpush.msra.mxu3 %v147_v39  ;;  %v166_v50 = vld [vmem:[#allocation7] sm:$0xff]  ;;  %v176_v51 = vld [vmem:[#allocation7 + $0x50] sm:$0xff]  ;;  %v173_v52 = vld [vmem:[#allocation7 + $0x38] sm:$0xff]  ;;  %s714_s23 = sshll.u32 %s1247_s19, 4  ;;  %s715_s23 = int_to_ptr.hbm [resolvable:$true] %s714_s23 }
  0x26   :  { %299 = vmatpush.msra.mxu2 %v132_v33  ;;  %349 = vmatpush.msrb.mxu0 %v148_v40  ;;  %v170_v53 = vld [vmem:[#allocation7 + $0x20] sm:$0xff]  ;;  %v167_v54 = vld [vmem:[#allocation7 + $0x8] sm:$0xff]  ;;  %v177_v55 = vld [vmem:[#allocation7 + $0x58] sm:$0xff] }
  0x27   :  { %369 = vmatpush.msrb.mxu1 %v149_v41  ;;  %330 = vmatpush.msra.mxu3 %v144_v43  ;;  %v174_v56 = vld [vmem:[#allocation7 + $0x40] sm:$0xff]  ;;  %v171_v57 = vld [vmem:[#allocation7 + $0x28] sm:$0xff]  ;;  %v168_v58 = vld [vmem:[#allocation7 + $0x10] sm:$0xff] }
  0x28   :  { %388 = vmatpush.msrb.mxu2 %v175_v37  ;;  %350 = vmatpush.msrb.mxu0 %v145_v44  ;;  %v280_v59 = vld [vmem:[%s1234_s3] sm:$0x1]  ;;  %v165_v14 = vld [vmem:[#allocation5 + $0xb8] sm:$0xff]  ;;  %v160_v16 = vld [vmem:[#allocation5 + $0x90] sm:$0xff] }
  0x29   :  { %370 = vmatpush.msrb.mxu1 %v146_v45  ;;  %331 = vmatpush.msra.mxu3 %v141_v47  ;;  %v1186_v63 = vld [vmem:[%s1239_s8] sm:$0x7]  ;;  %v188_v17 = vld [vmem:[#allocation7 + $0xa8] sm:$0xff]  ;;  %v161_v18 = vld [vmem:[#allocation5 + $0x98] sm:$0xff] }
  0x2a   :  { %389 = vmatpush.msrb.mxu2 %v172_v42  ;;  %351 = vmatpush.msrb.mxu0 %v142_v48  ;;  %v307_v0 = vperm.slane %v1186_v63, 0  ;;  %v162_v19 = vld [vmem:[#allocation5 + $0xa0] sm:$0xff]  ;;  %v157_v20 = vld [vmem:[#allocation5 + $0x78] sm:$0xff]  ;;  %v180_v37 = vld [vmem:[#allocation7 + $0x68] sm:$0xff] }
  0x2b   :  { %371 = vmatpush.msrb.mxu1 %v143_v49  ;;  %408 = vmatpush.msrb.mxu3 %v176_v51  ;;  %v186_v33 = vld [vmem:[#allocation7 + $0x98] sm:$0xff]  ;;  %v183_v35 = vld [vmem:[#allocation7 + $0x80] sm:$0xff]  ;;  %v181_v51 = vld [vmem:[#allocation7 + $0x70] sm:$0xff] }
  0x2c   :  { %390 = vmatpush.msrb.mxu2 %v169_v46  ;;  %428 = vmatpush.msra.mxu0 %v177_v55  ;;  %v190_v40 = vld [vmem:[#allocation7 + $0xb8] sm:$0xff]  ;;  %v187_v41 = vld [vmem:[#allocation7 + $0xa0] sm:$0xff]  ;;  %v184_v46 = vld [vmem:[#allocation7 + $0x88] sm:$0xff] }
  0x2d   :  { %409 = vmatpush.msrb.mxu3 %v173_v52  ;;  %v194_v43 = vld [vmem:[#allocation8] sm:$0x1] }
  0x2e   :  { %391 = vmatpush.msrb.mxu2 %v166_v50  ;;  %429 = vmatpush.msra.mxu0 %v174_v56  ;;  %v309_v50 = vperm.slane %v1186_v63, 2 }
  0x2f   :  { %410 = vmatpush.msrb.mxu3 %v170_v53 }
  0x30   :  { %430 = vmatpush.msra.mxu0 %v171_v57 }
  0x31   :  { %411 = vmatpush.msrb.mxu3 %v167_v54 }
  0x32   :  { %431 = vmatpush.msra.mxu0 %v168_v58 }
  0xa0   :  { %v222_v6 = vpop.f32.mrf.mxu0 }
  0xa1   :  { %v225_v7 = vadd.f32 %v222_v6, %v200_v5  ;;  %v308_v5 = vperm.slane %v1186_v63, 1 }
  0xa3   :  { %v227_v8 = vsel %vm226_vm1, %v225_v7, -inf }
  0xa4   :  { %228 = vmax.xlane.f32.xlu0 %v227_v8 }
 0x117   :  { %v229_v9 = vpop.xlane.xlu0 %228 }
 0x118   :  { %v230_v10 = vsub.f32 %v225_v7, %v229_v9 }
 0x11a   :  { %v231_v11 = vmul.f32 1.442695, %v230_v10 }
 0x11c   :  { %796 = vpow2.f32 %v231_v11 }
 0x122   :  { %v797_v12 = vpop.eup %796 }
 0x123   :  { %v233_v13 = vsel %vm226_vm1, %v797_v12, 0.0 }
 0x124   :  { %234 = vadd.xlane.f32.xlu0 %v233_v13  ;;  %v164_v13 = vld [vmem:[#allocation5 + $0xb0] sm:$0xff] }
 0x197   :  { %v235_v21 = vpop.xlane.xlu0 %234 }
 0x198   :  { %798 = vrcp.f32 %v235_v21  ;;  %v247_v25 = vand.u32 2147483648, %v235_v21  ;;  %v245_v27 = vand.u32 2147483647, %v235_v21  ;;  %vm241_vm4 = vweird.f32 %v235_v21 }
 0x19a   :  { %v248_v29 = vor.u32 1.1754944e-38, %v247_v25  ;;  %vm246_vm6 = vcmp.eq.f32.partialorder %v245_v27, 8.507059e+37  ;;  %v154_v25 = vld [vmem:[#allocation5 + $0x60] sm:$0xff]  ;;  %v182_v27 = vld [vmem:[#allocation7 + $0x78] sm:$0xff] }
 0x19e   :  { %v799_v22 = vpop.eup %798 }
 0x19f   :  { %v237_v23 = vmul.f32 %v799_v22, %v235_v21  ;;  %vm242_vm3 = vweird.f32 %v799_v22  ;;  %v185_v21 = vld [vmem:[#allocation7 + $0x90] sm:$0xff] }
 0x1a0   :  { %vm243_vm5 = vmor %vm241_vm4, %vm242_vm3 }
 0x1a1   :  { %v238_v24 = vsub.f32 1.0, %v237_v23  ;;  %v158_v23 = vld [vmem:[#allocation5 + $0x80] sm:$0xff] }
 0x1a3   :  { %v239_v26 = vmul.f32 %v799_v22, %v238_v24  ;;  %v159_v24 = vld [vmem:[#allocation5 + $0x88] sm:$0xff] }
 0x1a5   :  { %v240_v28 = vadd.f32 %v799_v22, %v239_v26 }
 0x1a7   :  { %v244_v30 = vsel %vm243_vm5, %v799_v22, %v240_v28  ;;  %v155_v28 = vld [vmem:[#allocation5 + $0x68] sm:$0xff] }
 0x1a8   :  { %v249_v31 = vsel %vm246_vm6, %v248_v29, %v244_v30  ;;  %v156_v29 = vld [vmem:[#allocation5 + $0x70] sm:$0xff]  ;;  %v179_v30 = vld [vmem:[#allocation7 + $0x60] sm:$0xff] }
 0x1a9   :  { %v250_v32 = vmul.f32 %v797_v12, %v249_v31  ;;  %v163_v12 = vld [vmem:[#allocation5 + $0xa8] sm:$0xff]  ;;  %v189_v31 = vld [vmem:[#allocation7 + $0xb0] sm:$0xff] }
 0x1ab   :  { %763 = vmatmul.msk.f32.vlgmr.msra.gmra.mxu1 %vm252_vm7, %v250_v32  ;;  %251 = vst.msk [vmem:[#allocation14] sm:$0x1] %vm226_vm1, %v250_v32  ;;  %v1193_v32 = vld [vmem:[%s1231_s0 + $0x1] sm:$0x1]  ;;  %vm703_vm1 = vcmask 253952  }
 0x1ac   :  { %506 = vmatpush.msra.mxu1 %v163_v12 }
 0x1ae   :  { %507 = vmatpush.msra.mxu1 %v160_v16 }
 0x1b0   :  { %508 = vmatpush.msra.mxu1 %v157_v20 }
 0x1b2   :  { %509 = vmatpush.msra.mxu1 %v154_v25  ;;  %v138_v25 = vld [vmem:[#allocation10 + $0x10] sm:$0xff] }
 0x228   :  { %v277_v38 = vpop.f32.mrf.mxu1 }
 0x229   :  { %764 = vmatmul.msk.f32.vlgmr.msra.gmra.mxu2 %vm201_vm0, %v277_v38 }
 0x22a   :  { %526 = vmatpush.msra.mxu2 %v164_v13 }
 0x22c   :  { %527 = vmatpush.msra.mxu2 %v161_v18 }
 0x22e   :  { %528 = vmatpush.msra.mxu2 %v158_v23  ;;  %v139_v23 = vld [vmem:[#allocation10 + $0x18] sm:$0xff] }
 0x230   :  { %529 = vmatpush.msra.mxu2 %v155_v28  ;;  %v136_v28 = vld [vmem:[#allocation10] sm:$0xff] }
 0x231   :  { %768 = vmatmul.msk.f32.vlgmr.msrb.gmra.mxu2 %vm201_vm0, %v1148_v4 }
 0x232   :  { %609 = vmatpush.msrb.mxu2 %v190_v40 }
 0x234   :  { %610 = vmatpush.msrb.mxu2 %v187_v41 }
 0x236   :  { %611 = vmatpush.msrb.mxu2 %v184_v46 }
 0x238   :  { %612 = vmatpush.msrb.mxu2 %v181_v51 }
 0x2ac   :  { %v301_v60 = vpop.f32.mrf.mxu2 }
 0x2ad   :  { %v304_v61 = vadd.f32 %v301_v60, %v280_v59 }
 0x2af   :  { %v305_v62 = vmax.f32 %v304_v61, 0.0 }
 0x2b1   :  { %765 = vmatmul.msk.f32.vlgmr.msra.gmra.mxu3 %vm201_vm0, %v305_v62  ;;  %766 = vmatmul.msk.f32.vlgmr.msrb.gmra.mxu0 %vm201_vm0, %v305_v62 }
 0x2b2   :  { %767 = vmatmul.msk.f32.vlgmr.msrb.gmra.mxu1 %vm201_vm0, %v305_v62  ;;  %546 = vmatpush.msra.mxu3 %v165_v14 }
 0x2b3   :  { %569 = vmatpush.msrb.mxu0 %v188_v17  ;;  %589 = vmatpush.msrb.mxu1 %v189_v31 }
 0x2b4   :  { %v393_v2 = vpop.f32.mrf.mxu2  ;;  %547 = vmatpush.msra.mxu3 %v162_v19 }
 0x2b5   :  { %570 = vmatpush.msrb.mxu0 %v185_v21  ;;  %590 = vmatpush.msrb.mxu1 %v186_v33 }
 0x2b6   :  { %548 = vmatpush.msra.mxu3 %v159_v24 }
 0x2b7   :  { %571 = vmatpush.msrb.mxu0 %v182_v27  ;;  %591 = vmatpush.msrb.mxu1 %v183_v35 }
 0x2b8   :  { %549 = vmatpush.msra.mxu3 %v156_v29 }
 0x2b9   :  { %769 = vmatmul.msk.f32.vlgmr.msrb.gmra.mxu3 %vm201_vm0, %v1148_v4  ;;  %770 = vmatmul.msk.f32.vlgmr.msra.gmra.mxu0 %vm201_vm0, %v1148_v4 }
 0x2ba   :  { %572 = vmatpush.msrb.mxu0 %v179_v30  ;;  %592 = vmatpush.msrb.mxu1 %v180_v37 }
 0x2bb   :  { %680 = vmatpush.msrb.mxu3 %v139_v23 }
 0x2bd   :  { %681 = vmatpush.msrb.mxu3 %v138_v25 }
 0x2c1   :  { %776 = vmatmul.msk.f32.vlgmr.msrb.gmra.mxu0 %vm201_vm0, %v1193_v32 }
 0x32e   :  { %v353_v7 = vpop.f32.mrf.mxu0 }
 0x32f   :  { %v354_v9 = vadd.f32 %v353_v7, %v308_v5  ;;  %v373_v52 = vpop.f32.mrf.mxu1 }
 0x330   :  { %v374_v59 = vadd.f32 %v373_v52, %v309_v50 }
 0x334   :  { %v333_v1 = vpop.f32.mrf.mxu3 }
 0x335   :  { %v334_v3 = vadd.f32 %v333_v1, %v307_v0 }
 0x336   :  { %v433_v44 = vpop.f32.mrf.mxu0 }
 0x337   :  { %v436_v6 = vadd.f32 %v393_v2, %v334_v3  ;;  %v476_v55 = vadd.f32 %v433_v44, %v194_v43 }
 0x339   :  { %v771_v8 = vmul.f32 -1.442695, %v436_v6 }
 0x33b   :  { %800 = vpow2.f32 %v771_v8 }
 0x33c   :  { %v413_v10 = vpop.f32.mrf.mxu3 }
 0x33d   :  { %v437_v11 = vadd.f32 %v413_v10, %v354_v9 }
 0x33e   :  { %v574_v14 = vpop.f32.mrf.mxu0 }
 0x33f   :  { %v772_v15 = vmul.f32 -1.442695, %v437_v11 }
 0x341   :  { %v801_v22 = vpop.eup %800  ;;  %802 = vpow2.f32 %v772_v15 }
 0x342   :  { %v444_v26 = vadd.f32 1.0, %v801_v22 }
 0x344   :  { %804 = vrcp.f32 %v444_v26  ;;  %v457_v45 = vand.u32 2147483648, %v444_v26  ;;  %v455_v48 = vand.u32 2147483647, %v444_v26  ;;  %vm451_vm9 = vweird.f32 %v444_v26 }
 0x346   :  { %v458_v56 = vor.u32 1.1754944e-38, %v457_v45  ;;  %vm456_vm11 = vcmp.eq.f32.partialorder %v455_v48, 8.507059e+37 }
 0x347   :  { %v803_v34 = vpop.eup %802 }
 0x348   :  { %v445_v36 = vadd.f32 1.0, %v803_v34 }
 0x34a   :  { %v805_v38 = vpop.eup %804  ;;  %806 = vrcp.f32 %v445_v36  ;;  %v472_v62 = vand.u32 2147483648, %v445_v36  ;;  %v470_v63 = vand.u32 2147483647, %v445_v36  ;;  %vm466_vm13 = vweird.f32 %v445_v36 }
 0x34b   :  { %v447_v39 = vmul.f32 %v805_v38, %v444_v26  ;;  %vm452_vm8 = vweird.f32 %v805_v38  ;;  %v137_v26 = vld [vmem:[#allocation10 + $0x8] sm:$0xff] }
 0x34c   :  { %vm453_vm10 = vmor %vm451_vm9, %vm452_vm8  ;;  %v473_v3 = vor.u32 1.1754944e-38, %v472_v62  ;;  %vm471_vm15 = vcmp.eq.f32.partialorder %v470_v63, 8.507059e+37  ;;  %682 = vmatpush.msrb.mxu3 %v137_v26 }
 0x34d   :  { %v448_v42 = vsub.f32 1.0, %v447_v39 }
 0x34e   :  { %683 = vmatpush.msrb.mxu3 %v136_v28 }
 0x34f   :  { %v449_v47 = vmul.f32 %v805_v38, %v448_v42 }
 0x350   :  { %v807_v49 = vpop.eup %806 }
 0x351   :  { %v462_v53 = vmul.f32 %v807_v49, %v445_v36  ;;  %v450_v54 = vadd.f32 %v805_v38, %v449_v47  ;;  %vm467_vm12 = vweird.f32 %v807_v49  ;;  %v196_v36 = vld [vmem:[#allocation8 + $0x1] sm:$0x1] }
 0x352   :  { %vm468_vm14 = vmor %vm466_vm13, %vm467_vm12 }
 0x353   :  { %v463_v57 = vsub.f32 1.0, %v462_v53  ;;  %v454_v58 = vsel %vm453_vm10, %v805_v38, %v450_v54  ;;  %vm688_vm10 = vcmask 401408  }
 0x354   :  { %v459_v60 = vsel %vm456_vm11, %v458_v56, %v454_v58 }
 0x355   :  { %v464_v61 = vmul.f32 %v807_v49, %v463_v57  ;;  %v477_v0 = vmul.f32 %v476_v55, %v459_v60 }
 0x357   :  { %v465_v1 = vadd.f32 %v807_v49, %v464_v61  ;;  %v478_v2 = vadd.f32 %v477_v0, %v374_v59 }
 0x359   :  { %v469_v5 = vsel %vm468_vm14, %v807_v49, %v465_v1  ;;  %808 = vtanh.f32 %v478_v2  ;;  %v140_v2 = vld [vmem:[%s1242_s11] sm:$0x1]  ;;  %s724_s11 = sshll.u32 %s1244_s13, 4  ;;  %s1039_s13 = smov [#allocation11]   ;;  %s725_s11 = int_to_ptr.hbm [resolvable:$true] %s724_s11 }
 0x35a   :  { %v474_v6 = vsel %vm471_vm15, %v473_v3, %v469_v5  ;;  %s712_s17 = sshll.u32 %s1039_s13, 4  ;;  %s713_s17 = int_to_ptr.vmem [resolvable:$true] %s712_s17 }
 0x35b   :  { %v480_v7 = vsub.f32 1.0, %v474_v6  ;;  %v482_v10 = vmul.f32 %v474_v6, %v1148_v4  ;;  %v759_v4 = vld [vmem:[%s1239_s8 + $0x3] sm:$0x7] }
 0x35c   :  { %v485_v12 = vperm.slane %v759_v4, 0  ;;  %v486_v17 = vperm.slane %v759_v4, 1  ;;  %v487_v42 = vperm.slane %v759_v4, 2 }
 0x35f   :  { %v809_v8 = vpop.eup %808 }
 0x360   :  { %v481_v9 = vmul.f32 %v809_v8, %v480_v7 }
 0x362   :  { %v483_v11 = vadd.f32 %v482_v10, %v481_v9 }
 0x364   :  { %773 = vmatmul.msk.f32.vlgmr.msra.gmra.mxu1 %vm201_vm0, %v483_v11  ;;  %774 = vmatmul.msk.f32.vlgmr.msra.gmra.mxu2 %vm201_vm0, %v483_v11  ;;  %704 = vst.msk [vmem:[#allocation12] sm:$0x1] %vm703_vm1, %v483_v11 }
 0x365   :  { %775 = vmatmul.msk.f32.vlgmr.msra.gmra.mxu3 %vm201_vm0, %v483_v11 }
 0x36c   :  { %777 = vmatmul.msk.f32.vlgmr.msrb.gmra.mxu1 %vm201_vm0, %v1193_v32  ;;  %778 = vmatmul.msk.f32.vlgmr.msrb.gmra.mxu2 %vm201_vm0, %v1193_v32 }
 0x3e1   :  { %v511_v13 = vpop.f32.mrf.mxu1 }
 0x3e2   :  { %v512_v15 = vadd.f32 %v511_v13, %v485_v12 }
 0x3e4   :  { %v617_v16 = vadd.f32 %v574_v14, %v512_v15 }
 0x3e6   :  { %v779_v18 = vmul.f32 -1.442695, %v617_v16 }
 0x3e7   :  { %v531_v19 = vpop.f32.mrf.mxu2 }
 0x3e8   :  { %810 = vpow2.f32 %v779_v18  ;;  %v532_v20 = vadd.f32 %v531_v19, %v486_v17  ;;  %v551_v43 = vpop.f32.mrf.mxu3 }
 0x3e9   :  { %v594_v21 = vpop.f32.mrf.mxu1  ;;  %v552_v50 = vadd.f32 %v551_v43, %v487_v42 }
 0x3ea   :  { %v618_v22 = vadd.f32 %v594_v21, %v532_v20 }
 0x3ec   :  { %v780_v24 = vmul.f32 -1.442695, %v618_v22 }
 0x3ee   :  { %v811_v27 = vpop.eup %810  ;;  %812 = vpow2.f32 %v780_v24 }
 0x3ef   :  { %v625_v29 = vadd.f32 1.0, %v811_v27  ;;  %v614_v37 = vpop.f32.mrf.mxu2 }
 0x3f0   :  { %v657_v46 = vadd.f32 %v614_v37, %v196_v36 }
 0x3f1   :  { %814 = vrcp.f32 %v625_v29  ;;  %v638_v38 = vand.u32 2147483648, %v625_v29  ;;  %v636_v40 = vand.u32 2147483647, %v625_v29  ;;  %vm632_vm3 = vweird.f32 %v625_v29 }
 0x3f3   :  { %v639_v47 = vor.u32 1.1754944e-38, %v638_v38  ;;  %vm637_vm5 = vcmp.eq.f32.partialorder %v636_v40, 8.507059e+37 }
 0x3f4   :  { %v813_v30 = vpop.eup %812 }
 0x3f5   :  { %v626_v31 = vadd.f32 1.0, %v813_v30 }
 0x3f7   :  { %v815_v33 = vpop.eup %814  ;;  %816 = vrcp.f32 %v626_v31  ;;  %v653_v53 = vand.u32 2147483648, %v626_v31  ;;  %v651_v55 = vand.u32 2147483647, %v626_v31  ;;  %vm647_vm7 = vweird.f32 %v626_v31 }
 0x3f8   :  { %v628_v34 = vmul.f32 %v815_v33, %v625_v29  ;;  %vm633_vm2 = vweird.f32 %v815_v33 }
 0x3f9   :  { %vm634_vm4 = vmor %vm632_vm3, %vm633_vm2  ;;  %v654_v58 = vor.u32 1.1754944e-38, %v653_v53  ;;  %vm652_vm9 = vcmp.eq.f32.partialorder %v651_v55, 8.507059e+37 }
 0x3fa   :  { %v629_v35 = vsub.f32 1.0, %v628_v34 }
 0x3fc   :  { %v630_v39 = vmul.f32 %v815_v33, %v629_v35 }
 0x3fd   :  { %v817_v41 = vpop.eup %816 }
 0x3fe   :  { %v643_v44 = vmul.f32 %v817_v41, %v626_v31  ;;  %v631_v45 = vadd.f32 %v815_v33, %v630_v39  ;;  %vm648_vm6 = vweird.f32 %v817_v41 }
 0x3ff   :  { %vm649_vm8 = vmor %vm647_vm7, %vm648_vm6 }
 0x400   :  { %v644_v48 = vsub.f32 1.0, %v643_v44  ;;  %v635_v49 = vsel %vm634_vm4, %v815_v33, %v631_v45 }
 0x401   :  { %v640_v51 = vsel %vm637_vm5, %v639_v47, %v635_v49 }
 0x402   :  { %v645_v52 = vmul.f32 %v817_v41, %v644_v48  ;;  %v658_v54 = vmul.f32 %v657_v46, %v640_v51 }
 0x404   :  { %v646_v56 = vadd.f32 %v817_v41, %v645_v52  ;;  %v659_v57 = vadd.f32 %v658_v54, %v552_v50 }
 0x406   :  { %v650_v59 = vsel %vm649_vm8, %v817_v41, %v646_v56  ;;  %818 = vtanh.f32 %v659_v57 }
 0x407   :  { %v655_v60 = vsel %vm652_vm9, %v654_v58, %v650_v59 }
 0x408   :  { %v661_v61 = vsub.f32 1.0, %v655_v60  ;;  %v663_v63 = vmul.f32 %v1193_v32, %v655_v60 }
 0x40c   :  { %v819_v62 = vpop.eup %818 }
 0x40d   :  { %v662_v0 = vmul.f32 %v819_v62, %v661_v61 }
 0x40f   :  { %v664_v1 = vadd.f32 %v663_v63, %v662_v0 }
 0x411   :  { %781 = vmatmul.msk.f32.vlgmr.msrb.gmra.mxu3 %vm201_vm0, %v664_v1  ;;  %706 = vst.msk [vmem:[#allocation12 + $0x1] sm:$0x1] %vm703_vm1, %v664_v1 }
 0x412   :  { %730 = dma.vmem_to_hbm [thread:$0]  %s723_s21, 32, %s725_s11, [#allocation13], %s1030_s25, %s1030_s25, %s1031_s26  }
 0x413   :  { %741 = dma.vmem_to_hbm [thread:$0]  %s737_s30, 16, %s739_s4, [#allocation13]  }
 0x494   :  { %v685_v3 = vpop.f32.mrf.mxu3 }
 0x495   :  { %v686_v5 = vadd.f32 %v685_v3, %v140_v2 }
 0x497   :  { %v689_v6 = vsel %vm688_vm10, %v686_v5, -inf }
 0x498   :  { %690 = vmax.xlane.f32.xlu1 %v689_v6 }
 0x50b   :  { %v691_v7 = vpop.xlane.xlu1 %690 }
 0x50c   :  { %v692_v8 = vsub.f32 %v686_v5, %v691_v7 }
 0x50e   :  { %v693_v9 = vmul.f32 1.442695, %v692_v8 }
 0x510   :  { %820 = vpow2.f32 %v693_v9 }
 0x516   :  { %v821_v32 = vpop.eup %820 }
 0x517   :  { %v695_v10 = vsel %vm688_vm10, %v821_v32, 0.0 }
 0x518   :  { %696 = vadd.xlane.f32.xlu1 %v695_v10 }
 0x58b   :  { %v697_v11 = vpop.xlane.xlu1 %696 }
 0x58c   :  { %822 = vlog2.f32 %v697_v11 }
 0x592   :  { %v823_v4 = vpop.eup %822 }
 0x593   :  { %v699_v12 = vmul.f32 0.6931472, %v823_v4 }
 0x595   :  { %v700_v13 = vadd.f32 %v699_v12, %v691_v7 }
 0x597   :  { %v701_v14 = vsub.f32 %v686_v5, %v700_v13 }
 0x599   :  { %702 = vst.msk [vmem:[#allocation11] sm:$0x1] %vm688_vm10, %v701_v14 }
 0x59a   :  { %717 = dma.vmem_to_hbm [thread:$0]  %s713_s17, 16, %s715_s23, [#allocation4]  }
 0x59b   :  { %1022 = dma.done.wait [#allocation4], 16  }
 0x59c   :  { %1023 = vsyncadd [#allocation4], 4294967280 }
 0x59d   :  { %1024 = dma.done.wait [#allocation13], 48  }
 0x59e   :  { %1025 = vsyncadd [#allocation13], 4294967248 }
 0x59f   :  { %754 = vsyncpa [#allocation3], 1 }
 0x5a0   :  { %755 = vsyncpa [#allocation6], 1 }
 0x5a1   :  { %756 = vsyncpa [#allocation9], 1 }
 0x5a2   :  { %757 = vsyncpa [#allocation4], 1 }
 0x5a3   :  { %758 = vsyncpa [#allocation13], 1 }

</bundles_post_ra>
